<compile_context>
chip_gen: v6e
topology: v6e:2x2x1
jax: 0.10.0
libtpu: 0.0.40
codegen_flags: <defaults>
</compile_context>

<pallas_src>
import jax
import jax.numpy as jnp
from jax.experimental import pallas as pl
from jax.experimental.pallas import tpu as pltpu


def _round_up(x, m):
    return ((x + m - 1) // m) * m


def _change_detection_kernel(x1_ref, x2_ref, w1_ref, b1_ref, w2_ref, b2_ref, o_ref):
    # x1_ref/x2_ref: (TM, F) tile of flattened rows
    # w1_ref: (F, Hp), b1_ref: (1, Hp), w2_ref: (Hp, Op), b2_ref: (1, Op)
    # o_ref: (TM, Op)
    d = jnp.abs(x1_ref[...] - x2_ref[...])
    # MXU operands stay in native dtype; accumulation in f32.
    h = jnp.dot(d, w1_ref[...], preferred_element_type=jnp.float32)
    h = jnp.maximum(h + b1_ref[...].astype(jnp.float32), 0.0)
    y = jnp.dot(h.astype(w2_ref.dtype), w2_ref[...],
                preferred_element_type=jnp.float32)
    o_ref[...] = (y + b2_ref[...].astype(jnp.float32)).astype(o_ref.dtype)


def change_detection(x1, x2, w1, b1, w2, b2):
    """x1, x2: (B, C, D). Returns (B, O) = Linear2(ReLU(Linear1(|x1-x2| flat)))."""
    B, C, D = x1.shape
    F = C * D
    H = w1.shape[1]
    O = w2.shape[1]
    assert w1.shape == (F, H) and b1.shape == (H,)
    assert w2.shape == (H, O) and b2.shape == (O,)

    dt = x1.dtype
    itemsize = jnp.dtype(dt).itemsize
    # dtype-aware sublane multiple (packed rows for sub-32-bit dtypes).
    sub = {4: 8, 2: 16, 1: 32}.get(itemsize, 8)

    x1f = x1.reshape(B, F)
    x2f = x2.reshape(B, F)

    # Hidden dim zero-padded to a full 128-lane tile (numerically identical:
    # ReLU(0)=0 and padded W2 rows are zero).
    Hp = _round_up(H, 128)
    # Output lane-pad only when input rows are wide enough that the padded
    # write is a small fraction of HBM traffic; otherwise store (TM, O) directly.
    small_f = (F * itemsize) <= 1024
    Op = O if small_f else _round_up(O, 128)

    w1p = jnp.pad(w1.astype(dt), ((0, 0), (0, Hp - H)))
    b1p = jnp.pad(b1.astype(dt), ((0, Hp - H),)).reshape(1, Hp)
    w2p = jnp.pad(w2.astype(dt), ((0, Hp - H), (0, Op - O)))
    b2p = jnp.pad(b2.astype(dt), ((0, Op - O),)).reshape(1, Op)

    # ---- generation-aware VMEM budget -> row tile -------------------------
    try:
        info = pltpu.get_tpu_info()
        vmem_cap = int(getattr(info, "vmem_capacity_bytes", 128 << 20))
    except Exception:
        vmem_cap = 128 << 20
    # Leave headroom for Mosaic internal scratch; cap below physical on
    # v5e/v6e (128 MiB) and well under v7x's 64 MiB.
    vmem_budget = max(16 << 20, min(vmem_cap - (8 << 20), 110 << 20))

    # Single-buffered resident weights/biases.
    resident = (F * Hp + Hp * Op + Hp + Op) * itemsize
    # Per-row cost: double-buffered x1/x2/out tiles + abs-diff temp + f32 temps.
    per_row = (2 * (2 * F + Op) * itemsize + F * itemsize + (Hp + Op) * 4)

    tile_m = (vmem_budget - resident - (2 << 20)) // per_row
    tile_m = max(sub, min((int(tile_m) // sub) * sub, 1024, _round_up(B, sub)))

    # Megacore (v7x has 2 TCs): make sure the grid has >= 2 steps when the
    # batch is large enough to split; harmless on 1-TC chips (mem-bound).
    if pl.cdiv(B, tile_m) < 2 and B > sub:
        tile_m = max(sub, _round_up(pl.cdiv(B, 2), sub))

    grid = (pl.cdiv(B, tile_m),)

    need = resident + tile_m * per_row + (2 << 20)
    vmem_limit = int(min(max(need, 16 << 20), vmem_budget))

    cost = pl.CostEstimate(
        flops=2 * B * F * Hp + 2 * B * Hp * Op + 3 * B * F,
        transcendentals=0,
        bytes_accessed=(2 * B * F + F * Hp + Hp + Hp * Op + Op + B * Op) * itemsize,
    )

    def _call(weight_mode):
        def wspec(shape):
            if weight_mode is None:
                return pl.BlockSpec(shape, lambda i: (0, 0))
            return pl.BlockSpec(shape, lambda i: (0, 0), pipeline_mode=weight_mode)

        return pl.pallas_call(
            _change_detection_kernel,
            out_shape=jax.ShapeDtypeStruct((B, Op), dt),
            grid_spec=pltpu.PrefetchScalarGridSpec(
                num_scalar_prefetch=0,
                grid=grid,
                in_specs=[
                    pl.BlockSpec((tile_m, F), lambda i: (i, 0)),   # x1 row tile
                    pl.BlockSpec((tile_m, F), lambda i: (i, 0)),   # x2 row tile
                    wspec((F, Hp)),                                # W1 (resident)
                    wspec((1, Hp)),                                # b1
                    wspec((Hp, Op)),                               # W2 (resident)
                    wspec((1, Op)),                                # b2
                ],
                out_specs=pl.BlockSpec((tile_m, Op), lambda i: (i, 0)),
            ),
            compiler_params=pltpu.CompilerParams(
                dimension_semantics=("parallel",),
                vmem_limit_bytes=vmem_limit,
            ),
            cost_estimate=cost,
        )(x1f, x2f, w1p, b1p, w2p, b2p)

    try:
        # Resident weights: no double-buffer waste.
        out = _call(pl.Buffered(1))
    except Exception:
        # Fallback: default (double-buffered) weights if Buffered(1) is rejected.
        out = _call(None)

    return out if Op == O else out[:, :O]


if __name__ == "__main__":
    key = jax.random.PRNGKey(0)
    k1, k2, kw1, kb1, kw2, kb2 = jax.random.split(key, 6)

    # Change_detection(dim=16, dim_c=4, dropout=0.) on a batch of 2.
    dim, dim_c, B = 16, 4, 2
    F, H, O = dim * dim_c, 64, 2

    x1 = jax.random.normal(k1, (B, dim_c, dim), dtype=jnp.float32)
    x2 = jax.random.normal(k2, (B, dim_c, dim), dtype=jnp.float32)
    w1 = jax.random.normal(kw1, (F, H), dtype=jnp.float32) * 0.05
    b1 = jax.random.normal(kb1, (H,), dtype=jnp.float32) * 0.01
    w2 = jax.random.normal(kw2, (H, O), dtype=jnp.float32) * 0.05
    b2 = jax.random.normal(kb2, (O,), dtype=jnp.float32) * 0.01

    out = change_detection(x1, x2, w1, b1, w2, b2)
    out = jax.block_until_ready(out)

    # Pure-JAX reference with identical semantics (dropout is a no-op in forward).
    xd = jnp.abs(x1 - x2).reshape(B, F)
    ref = jnp.maximum(xd @ w1 + b1, 0.0) @ w2 + b2
    assert out.shape == (B, O)
    assert jnp.allclose(out, ref, atol=1e-3, rtol=1e-3), float(jnp.max(jnp.abs(out - ref)))

    print("KERNEL_OK")
</pallas_src>

<mosaic_0001>
module attributes {stable_mosaic.version = 11 : i64} {
  func.func @_change_detection_kernel(%arg0: i32, %arg1: memref<8x64xf32, #tpu.memory_space<vmem>>, %arg2: memref<8x64xf32, #tpu.memory_space<vmem>>, %arg3: memref<64x128xf32, #tpu.memory_space<vmem>>, %arg4: memref<1x128xf32, #tpu.memory_space<vmem>>, %arg5: memref<128x2xf32, #tpu.memory_space<vmem>>, %arg6: memref<1x2xf32, #tpu.memory_space<vmem>>, %arg7: memref<8x2xf32, #tpu.memory_space<vmem>>) attributes {dimension_semantics = [#tpu.dimension_semantics<parallel>], iteration_bounds = array<i64: 1>, scalar_prefetch = 0 : i64, scratch_operands = 0 : i64, tpu.core_type = #tpu.core_type<tc>, window_params = [{transform_indices = @transform_0, window_bounds = array<i64: 8, 64>}, {transform_indices = @transform_1, window_bounds = array<i64: 8, 64>}, {pipeline_mode = #tpu.pipeline_mode<synchronous>, transform_indices = @transform_2, window_bounds = array<i64: 64, 128>}, {pipeline_mode = #tpu.pipeline_mode<synchronous>, transform_indices = @transform_3, window_bounds = array<i64: 1, 128>}, {pipeline_mode = #tpu.pipeline_mode<synchronous>, transform_indices = @transform_4, window_bounds = array<i64: 128, 2>}, {pipeline_mode = #tpu.pipeline_mode<synchronous>, transform_indices = @transform_5, window_bounds = array<i64: 1, 2>}, {transform_indices = @transform_6, window_bounds = array<i64: 8, 2>}]} {
    %c0 = arith.constant 0 : index
    %c0_0 = arith.constant 0 : index
    %0 = vector.load %arg1[%c0, %c0_0] : memref<8x64xf32, #tpu.memory_space<vmem>>, vector<8x64xf32>
    %c0_1 = arith.constant 0 : index
    %c0_2 = arith.constant 0 : index
    %1 = vector.load %arg2[%c0_1, %c0_2] : memref<8x64xf32, #tpu.memory_space<vmem>>, vector<8x64xf32>
    %2 = arith.subf %0, %1 : vector<8x64xf32>
    %3 = math.absf %2 : vector<8x64xf32>
    %c0_3 = arith.constant 0 : index
    %c0_4 = arith.constant 0 : index
    %4 = vector.load %arg3[%c0_3, %c0_4] : memref<64x128xf32, #tpu.memory_space<vmem>>, vector<64x128xf32>
    %cst = arith.constant dense<0.000000e+00> : vector<8x128xf32>
    %5 = tpu.matmul %3, %4, %cst {dimension_numbers = #tpu.dot_dimension_numbers<[1], [0], [0], [1], [0, 0, 1, 1], [], []>} : vector<8x64xf32>, vector<64x128xf32>, vector<8x128xf32> -> vector<8x128xf32>
    %c0_5 = arith.constant 0 : index
    %c0_6 = arith.constant 0 : index
    %6 = vector.load %arg4[%c0_5, %c0_6] : memref<1x128xf32, #tpu.memory_space<vmem>>, vector<1x128xf32>
    %7 = vector.broadcast %6 : vector<1x128xf32> to vector<8x128xf32>
    %8 = arith.addf %5, %7 : vector<8x128xf32>
    %cst_7 = arith.constant 0.000000e+00 : f32
    %9 = vector.broadcast %cst_7 : f32 to vector<8x128xf32>
    %10 = arith.maximumf %8, %9 : vector<8x128xf32>
    %c0_8 = arith.constant 0 : index
    %c0_9 = arith.constant 0 : index
    %11 = vector.load %arg5[%c0_8, %c0_9] : memref<128x2xf32, #tpu.memory_space<vmem>>, vector<128x2xf32>
    %cst_10 = arith.constant dense<0.000000e+00> : vector<8x2xf32>
    %12 = tpu.matmul %10, %11, %cst_10 {dimension_numbers = #tpu.dot_dimension_numbers<[1], [0], [0], [1], [0, 0, 1, 1], [], []>} : vector<8x128xf32>, vector<128x2xf32>, vector<8x2xf32> -> vector<8x2xf32>
    %c0_11 = arith.constant 0 : index
    %c0_12 = arith.constant 0 : index
    %13 = vector.load %arg6[%c0_11, %c0_12] : memref<1x2xf32, #tpu.memory_space<vmem>>, vector<1x2xf32>
    %14 = vector.broadcast %13 : vector<1x2xf32> to vector<8x2xf32>
    %15 = arith.addf %12, %14 : vector<8x2xf32>
    %c0_13 = arith.constant 0 : index
    %c0_14 = arith.constant 0 : index
    %16 = vector.load %arg7[%c0_13, %c0_14] : memref<8x2xf32, #tpu.memory_space<vmem>>, vector<8x2xf32>
    tpu.vector_store %arg7[%c0_13, %c0_14], %15 {strides = array<i32>} : memref<8x2xf32, #tpu.memory_space<vmem>>, vector<8x2xf32>,
    return
  }
  func.func @transform_0(%arg0: i32) -> (i32, i32) {
    %c0_i32 = arith.constant 0 : i32
    %c0_i32_0 = arith.constant 0 : i32
    return %arg0, %c0_i32 : i32, i32
  }
  func.func @transform_1(%arg0: i32) -> (i32, i32) {
    %c0_i32 = arith.constant 0 : i32
    %c0_i32_0 = arith.constant 0 : i32
    return %arg0, %c0_i32 : i32, i32
  }
  func.func @transform_2(%arg0: i32) -> (i32, i32) {
    %c0_i32 = arith.constant 0 : i32
    %c0_i32_0 = arith.constant 0 : i32
    %c0_i32_1 = arith.constant 0 : i32
    return %c0_i32, %c0_i32_0 : i32, i32
  }
  func.func @transform_3(%arg0: i32) -> (i32, i32) {
    %c0_i32 = arith.constant 0 : i32
    %c0_i32_0 = arith.constant 0 : i32
    %c0_i32_1 = arith.constant 0 : i32
    return %c0_i32, %c0_i32_0 : i32, i32
  }
  func.func @transform_4(%arg0: i32) -> (i32, i32) {
    %c0_i32 = arith.constant 0 : i32
    %c0_i32_0 = arith.constant 0 : i32
    %c0_i32_1 = arith.constant 0 : i32
    return %c0_i32, %c0_i32_0 : i32, i32
  }
  func.func @transform_5(%arg0: i32) -> (i32, i32) {
    %c0_i32 = arith.constant 0 : i32
    %c0_i32_0 = arith.constant 0 : i32
    %c0_i32_1 = arith.constant 0 : i32
    return %c0_i32, %c0_i32_0 : i32, i32
  }
  func.func @transform_6(%arg0: i32) -> (i32, i32) {
    %c0_i32 = arith.constant 0 : i32
    %c0_i32_0 = arith.constant 0 : i32
    return %arg0, %c0_i32 : i32, i32
  }
}

module attributes {stable_mosaic.version = 11 : i64} {
  func.func @_change_detection_kernel(%arg0: i32, %arg1: memref<8x64xf32, #tpu.memory_space<vmem>>, %arg2: memref<8x64xf32, #tpu.memory_space<vmem>>, %arg3: memref<64x128xf32, #tpu.memory_space<vmem>>, %arg4: memref<1x128xf32, #tpu.memory_space<vmem>>, %arg5: memref<128x2xf32, #tpu.memory_space<vmem>>, %arg6: memref<1x2xf32, #tpu.memory_space<vmem>>, %arg7: memref<8x2xf32, #tpu.memory_space<vmem>>) attributes {dimension_semantics = [#tpu.dimension_semantics<parallel>], iteration_bounds = array<i64: 1>, scalar_prefetch = 0 : i64, scratch_operands = 0 : i64, tpu.core_type = #tpu.core_type<tc>, window_params = [{transform_indices = @transform_0, window_bounds = array<i64: 8, 64>}, {transform_indices = @transform_1, window_bounds = array<i64: 8, 64>}, {pipeline_mode = #tpu.pipeline_mode<synchronous>, transform_indices = @transform_2, window_bounds = array<i64: 64, 128>}, {pipeline_mode = #tpu.pipeline_mode<synchronous>, transform_indices = @transform_3, window_bounds = array<i64: 1, 128>}, {pipeline_mode = #tpu.pipeline_mode<synchronous>, transform_indices = @transform_4, window_bounds = array<i64: 128, 2>}, {pipeline_mode = #tpu.pipeline_mode<synchronous>, transform_indices = @transform_5, window_bounds = array<i64: 1, 2>}, {transform_indices = @transform_6, window_bounds = array<i64: 8, 2>}]} {
    %c0 = arith.constant 0 : index
    %c0_0 = arith.constant 0 : index
    %0 = vector.load %arg1[%c0, %c0_0] : memref<8x64xf32, #tpu.memory_space<vmem>>, vector<8x64xf32>
    %c0_1 = arith.constant 0 : index
    %c0_2 = arith.constant 0 : index
    %1 = vector.load %arg2[%c0_1, %c0_2] : memref<8x64xf32, #tpu.memory_space<vmem>>, vector<8x64xf32>
    %2 = arith.subf %0, %1 : vector<8x64xf32>
    %3 = math.absf %2 : vector<8x64xf32>
    %c0_3 = arith.constant 0 : index
    %c0_4 = arith.constant 0 : index
    %4 = vector.load %arg3[%c0_3, %c0_4] : memref<64x128xf32, #tpu.memory_space<vmem>>, vector<64x128xf32>
    %cst = arith.constant dense<0.000000e+00> : vector<8x128xf32>
    %5 = tpu.matmul %3, %4, %cst {dimension_numbers = #tpu.dot_dimension_numbers<[1], [0], [0], [1], [0, 0, 1, 1], [], []>} : vector<8x64xf32>, vector<64x128xf32>, vector<8x128xf32> -> vector<8x128xf32>
    %c0_5 = arith.constant 0 : index
    %c0_6 = arith.constant 0 : index
    %6 = vector.load %arg4[%c0_5, %c0_6] : memref<1x128xf32, #tpu.memory_space<vmem>>, vector<1x128xf32>
    %7 = vector.broadcast %6 : vector<1x128xf32> to vector<8x128xf32>
    %8 = arith.addf %5, %7 : vector<8x128xf32>
    %cst_7 = arith.constant 0.000000e+00 : f32
    %9 = vector.broadcast %cst_7 : f32 to vector<8x128xf32>
    %10 = arith.maximumf %8, %9 : vector<8x128xf32>
    %c0_8 = arith.constant 0 : index
    %c0_9 = arith.constant 0 : index
    %11 = vector.load %arg5[%c0_8, %c0_9] : memref<128x2xf32, #tpu.memory_space<vmem>>, vector<128x2xf32>
    %cst_10 = arith.constant dense<0.000000e+00> : vector<8x2xf32>
    %12 = tpu.matmul %10, %11, %cst_10 {dimension_numbers = #tpu.dot_dimension_numbers<[1], [0], [0], [1], [0, 0, 1, 1], [], []>} : vector<8x128xf32>, vector<128x2xf32>, vector<8x2xf32> -> vector<8x2xf32>
    %c0_11 = arith.constant 0 : index
    %c0_12 = arith.constant 0 : index
    %13 = vector.load %arg6[%c0_11, %c0_12] : memref<1x2xf32, #tpu.memory_space<vmem>>, vector<1x2xf32>
    %14 = vector.broadcast %13 : vector<1x2xf32> to vector<8x2xf32>
    %15 = arith.addf %12, %14 : vector<8x2xf32>
    %c0_13 = arith.constant 0 : index
    %c0_14 = arith.constant 0 : index
    %16 = vector.load %arg7[%c0_13, %c0_14] : memref<8x2xf32, #tpu.memory_space<vmem>>, vector<8x2xf32>
    tpu.vector_store %arg7[%c0_13, %c0_14], %15 {strides = array<i32>} : memref<8x2xf32, #tpu.memory_space<vmem>>, vector<8x2xf32>,
    return
  }
  func.func @transform_0(%arg0: i32) -> (i32, i32) {
    %c0_i32 = arith.constant 0 : i32
    %c0_i32_0 = arith.constant 0 : i32
    return %arg0, %c0_i32 : i32, i32
  }
  func.func @transform_1(%arg0: i32) -> (i32, i32) {
    %c0_i32 = arith.constant 0 : i32
    %c0_i32_0 = arith.constant 0 : i32
    return %arg0, %c0_i32 : i32, i32
  }
  func.func @transform_2(%arg0: i32) -> (i32, i32) {
    %c0_i32 = arith.constant 0 : i32
    %c0_i32_0 = arith.constant 0 : i32
    %c0_i32_1 = arith.constant 0 : i32
    return %c0_i32, %c0_i32_0 : i32, i32
  }
  func.func @transform_3(%arg0: i32) -> (i32, i32) {
    %c0_i32 = arith.constant 0 : i32
    %c0_i32_0 = arith.constant 0 : i32
    %c0_i32_1 = arith.constant 0 : i32
    return %c0_i32, %c0_i32_0 : i32, i32
  }
  func.func @transform_4(%arg0: i32) -> (i32, i32) {
    %c0_i32 = arith.constant 0 : i32
    %c0_i32_0 = arith.constant 0 : i32
    %c0_i32_1 = arith.constant 0 : i32
    return %c0_i32, %c0_i32_0 : i32, i32
  }
  func.func @transform_5(%arg0: i32) -> (i32, i32) {
    %c0_i32 = arith.constant 0 : i32
    %c0_i32_0 = arith.constant 0 : i32
    %c0_i32_1 = arith.constant 0 : i32
    return %c0_i32, %c0_i32_0 : i32, i32
  }
  func.func @transform_6(%arg0: i32) -> (i32, i32) {
    %c0_i32 = arith.constant 0 : i32
    %c0_i32_0 = arith.constant 0 : i32
    return %arg0, %c0_i32 : i32, i32
  }
}

</mosaic_0001>

<bundles_post_ra>
// kernel: tpu_custom_call.1
= control target key start
LH: loop header
LB: loop body
LE: loop exit
PB: predicated region body
PF: predicated region fallthrough
CT: control target
= control target key end

     0   :  { %11 = vsyncpa [#allocation3], 0  ;;  %v339_v1 = vmov 0.0   ;;  %vm340_vm0 = vmmov 0   ;;  %vm43_vm1 = vcmask 523264   ;;  %vm211_vm2 = vcmask 15360   ;;  %s492_s0 = inlined_call_operand.vmem [shape: f32[2,64], index: 0, kind: input, shape index: {}]   ;;  %s493_s1 = inlined_call_operand.vmem [shape: f32[2,64], index: 1, kind: input, shape index: {}]   ;;  %s494_s2 = inlined_call_operand.vmem [shape: f32[64,128], index: 2, kind: input, shape index: {}]   ;;  %s495_s3 = inlined_call_operand.vmem [shape: f32[1,128], index: 3, kind: input, shape index: {}]   ;;  %s496_s4 = inlined_call_operand.vmem [shape: f32[128,2], index: 4, kind: input, shape index: {}]   ;;  %s497_s5 = inlined_call_operand.vmem [shape: f32[1,2], index: 5, kind: input, shape index: {}]   ;;  %s498_s6 = inlined_call_operand.hbm [shape: f32[2,2], index: 6, kind: output, shape index: {}]  }
   0x1   :  { %v35_v0 = vld [vmem:[%s494_s2 + $0x38] sm:$0xff]  ;;  %258 = vmatprep.subr.mxu0 %v339_v1  ;;  %v34_v2 = vld [vmem:[%s494_s2 + $0x30] sm:$0xff]  ;;  %274 = vmatprep.mubr.msk.f32.mxu0 %vm340_vm0, %v339_v1  ;;  %v33_v3 = vld [vmem:[%s494_s2 + $0x28] sm:$0xff] }
   0x2   :  { %259 = vmatpush3.msra.mxu0 %v35_v0  ;;  %277 = vmatprep.subr.mxu1 %v339_v1  ;;  %v133_v4 = vld [vmem:[%s496_s4 + $0x78] sm:$0xff]  ;;  %v132_v5 = vld [vmem:[%s496_s4 + $0x70] sm:$0xff]  ;;  %v32_v6 = vld [vmem:[%s494_s2 + $0x20] sm:$0xff] }
   0x3   :  { %260 = vmatprep.subr.mxu0 %v339_v1  ;;  %309 = vmatprep.mubr.msk.f32.mxu1 %vm340_vm0, %v339_v1  ;;  %v131_v7 = vld [vmem:[%s496_s4 + $0x68] sm:$0xff]  ;;  %v24_v8 = vld [vmem:[%s492_s0] sm:$0xff]  ;;  %v31_v10 = vld [vmem:[%s494_s2 + $0x18] sm:$0xff] }
   0x4   :  { %261 = vmatpush3.msra.mxu0 %v34_v2  ;;  %278 = vmatpush3.msra.mxu1 %v133_v4  ;;  %v25_v9 = vld [vmem:[%s493_s1] sm:$0xff]  ;;  %v30_v12 = vld [vmem:[%s494_s2 + $0x10] sm:$0xff]  ;;  %v129_v14 = vld [vmem:[%s496_s4 + $0x58] sm:$0xff] }
   0x5   :  { %262 = vmatprep.subr.mxu0 %v339_v1  ;;  %279 = vmatprep.subr.mxu1 %v339_v1  ;;  %v130_v11 = vld [vmem:[%s496_s4 + $0x60] sm:$0xff]  ;;  %v26_v13 = vsub.f32 %v24_v8, %v25_v9  ;;  %v29_v15 = vld [vmem:[%s494_s2 + $0x8] sm:$0xff]  ;;  %v128_v16 = vld [vmem:[%s496_s4 + $0x50] sm:$0xff] }
   0x6   :  { %263 = vmatpush3.msra.mxu0 %v33_v3  ;;  %280 = vmatpush3.msra.mxu1 %v132_v5  ;;  %v28_v17 = vld [vmem:[%s494_s2] sm:$0xff]  ;;  %v127_v19 = vld [vmem:[%s496_s4 + $0x48] sm:$0xff]  ;;  %v125_v21 = vld [vmem:[%s496_s4 + $0x38] sm:$0xff] }
   0x7   :  { %264 = vmatprep.subr.mxu0 %v339_v1  ;;  %281 = vmatprep.subr.mxu1 %v339_v1  ;;  %v27_v18 = vand.u32 2147483647, %v26_v13  ;;  %v126_v20 = vld [vmem:[%s496_s4 + $0x40] sm:$0xff]  ;;  %v124_v22 = vld [vmem:[%s496_s4 + $0x30] sm:$0xff]  ;;  %v123_v23 = vld [vmem:[%s496_s4 + $0x28] sm:$0xff] }
   0x8   :  { %265 = vmatpush3.msra.mxu0 %v32_v6  ;;  %282 = vmatpush3.msra.mxu1 %v131_v7  ;;  %v122_v24 = vld [vmem:[%s496_s4 + $0x20] sm:$0xff]  ;;  %v121_v25 = vld [vmem:[%s496_s4 + $0x18] sm:$0xff]  ;;  %v120_v26 = vld [vmem:[%s496_s4 + $0x10] sm:$0xff] }
   0x9   :  { %266 = vmatprep.subr.mxu0 %v339_v1  ;;  %283 = vmatprep.subr.mxu1 %v339_v1  ;;  %v119_v27 = vld [vmem:[%s496_s4 + $0x8] sm:$0xff]  ;;  %v118_v28 = vld [vmem:[%s496_s4] sm:$0xff] }
   0xa   :  { %267 = vmatpush3.msra.mxu0 %v31_v10  ;;  %284 = vmatpush3.msra.mxu1 %v130_v11  ;;  %v229_v29 = vld [vmem:[%s495_s3] ss:$0 sm:$0xff] }
   0xb   :  { %268 = vmatprep.subr.mxu0 %v339_v1  ;;  %285 = vmatprep.subr.mxu1 %v339_v1  ;;  %v231_v34 = vld [vmem:[%s497_s5] ss:$0 sm:$0xff] }
   0xc   :  { %269 = vmatpush3.msra.mxu0 %v30_v12  ;;  %286 = vmatpush3.msra.mxu1 %v129_v14 }
   0xd   :  { %270 = vmatprep.subr.mxu0 %v339_v1  ;;  %287 = vmatprep.subr.mxu1 %v339_v1 }
   0xe   :  { %271 = vmatpush3.msra.mxu0 %v29_v15  ;;  %288 = vmatpush3.msra.mxu1 %v128_v16 }
   0xf   :  { %272 = vmatprep.subr.mxu0 %v339_v1  ;;  %289 = vmatprep.subr.mxu1 %v339_v1 }
  0x10   :  { %273 = vmatpush3.msra.mxu0 %v28_v17  ;;  %290 = vmatpush3.msra.mxu1 %v127_v19 }
  0x11   :  { %275 = vmatmul.mubr.msk.f32.vlgmr.msra.gmra.mxu0 %vm43_vm1, %v27_v18  ;;  %291 = vmatprep.subr.mxu1 %v339_v1 }
  0x12   :  { %292 = vmatpush3.msra.mxu1 %v126_v20 }
  0x13   :  { %293 = vmatprep.subr.mxu1 %v339_v1 }
  0x14   :  { %294 = vmatpush3.msra.mxu1 %v125_v21 }
  0x15   :  { %295 = vmatprep.subr.mxu1 %v339_v1 }
  0x16   :  { %296 = vmatpush3.msra.mxu1 %v124_v22 }
  0x17   :  { %297 = vmatprep.subr.mxu1 %v339_v1 }
  0x18   :  { %298 = vmatpush3.msra.mxu1 %v123_v23 }
  0x19   :  { %299 = vmatprep.subr.mxu1 %v339_v1 }
  0x1a   :  { %300 = vmatpush3.msra.mxu1 %v122_v24 }
  0x1b   :  { %301 = vmatprep.subr.mxu1 %v339_v1 }
  0x1c   :  { %302 = vmatpush3.msra.mxu1 %v121_v25 }
  0x1d   :  { %303 = vmatprep.subr.mxu1 %v339_v1 }
  0x1e   :  { %304 = vmatpush3.msra.mxu1 %v120_v26 }
  0x1f   :  { %305 = vmatprep.subr.mxu1 %v339_v1 }
  0x20   :  { %306 = vmatpush3.msra.mxu1 %v119_v27 }
  0x21   :  { %307 = vmatprep.subr.mxu1 %v339_v1 }
  0x22   :  { %308 = vmatpush3.msra.mxu1 %v118_v28 }
  0xd1   :  { %v113_v30 = vpop.f32.mrf.mxu0 }
  0xd2   :  { %v114_v31 = vadd.f32 %v229_v29, %v113_v30 }
  0xd3   :  { %v276_v32 = vpop.f32.mrf.mxu0 }
  0xd4   :  { %v117_v33 = vmax.f32 %v114_v31, 0.0 }
  0xd6   :  { %310 = vmatmul.mubr.f32.vlgmr.msra.gmra.mxu1 %v117_v33 }
 0x196   :  { %v207_v35 = vpop.f32.mrf.mxu1 }
 0x197   :  { %v208_v36 = vadd.f32 %v231_v34, %v207_v35 }
 0x198   :  { %v311_v37 = vpop.f32.mrf.mxu1 }
 0x199   :  { %212 = vst.msk [vmem:[#allocation2] sm:$0xff] %vm211_vm2, %v208_v36 }
 0x19a   :  { %217 = vsyncadd [#allocation3], 96  ;;  %s341_s4 = smov [#allocation2]  }
 0x19b   :  { %s218_s24 = sshll.u32 %s341_s4, 4  ;;  %s219_s24 = int_to_ptr.vmem [resolvable:$true] %s218_s24 }
 0x19c   :  { %s317_s25 = scalar_lea.vmem %s219_s24, 32  ;;  %s321_s3 = scalar_lea.vmem %s219_s24, 128 }
 0x19d   :  { %p318_p0 = scmp.ne.s32.totalorder %s219_s24, %s317_s25  ;;  %p322_p1 = scmp.lt.s32.totalorder %s219_s24, %s219_s24 }
 0x19e   :  { %p323_p2 = scmp.lt.s32.totalorder %s321_s3, %s317_s25 }
 0x1a0   :  { %p324_p3 = por %p323_p2, %p322_p1 }
 0x1a2   :  { %p325_p4 = pnand %p324_p3, %p318_p0 }
 0x1a4   :  { %328 = shalt.err (!%p325_p4)
}
 0x1a5   :  { %s342_s26 = smov 32   ;;  %s343_s27 = smov 2  }
 0x1a6   :  { %224 = dma.vmem_to_hbm [thread:$0]  %s219_s24, 32, %s498_s6, [#allocation3], %s342_s26, %s342_s26, %s343_s27  }
 0x1a7   :  { %337 = dma.done.wait [#allocation3], 128  }
 0x1a8   :  { %338 = vsyncadd [#allocation3], 4294967168 }
 0x1a9   :  { %228 = vsyncpa [#allocation3], 1 }

// kernel: tpu_custom_call.1
= control target key start
LH: loop header
LB: loop body
LE: loop exit
PB: predicated region body
PF: predicated region fallthrough
CT: control target
= control target key end

     0   :  { %11 = vsyncpa [#allocation3], 0  ;;  %v339_v1 = vmov 0.0   ;;  %vm340_vm0 = vmmov 0   ;;  %vm43_vm1 = vcmask 523264   ;;  %vm211_vm2 = vcmask 15360   ;;  %s492_s0 = inlined_call_operand.vmem [shape: f32[2,64], index: 0, kind: input, shape index: {}]   ;;  %s493_s1 = inlined_call_operand.vmem [shape: f32[2,64], index: 1, kind: input, shape index: {}]   ;;  %s494_s2 = inlined_call_operand.vmem [shape: f32[64,128], index: 2, kind: input, shape index: {}]   ;;  %s495_s3 = inlined_call_operand.vmem [shape: f32[1,128], index: 3, kind: input, shape index: {}]   ;;  %s496_s4 = inlined_call_operand.vmem [shape: f32[128,2], index: 4, kind: input, shape index: {}]   ;;  %s497_s5 = inlined_call_operand.vmem [shape: f32[1,2], index: 5, kind: input, shape index: {}]   ;;  %s498_s6 = inlined_call_operand.hbm [shape: f32[2,2], index: 6, kind: output, shape index: {}]  }
   0x1   :  { %v35_v0 = vld [vmem:[%s494_s2 + $0x38] sm:$0xff]  ;;  %258 = vmatprep.subr.mxu0 %v339_v1  ;;  %v34_v2 = vld [vmem:[%s494_s2 + $0x30] sm:$0xff]  ;;  %274 = vmatprep.mubr.msk.f32.mxu0 %vm340_vm0, %v339_v1  ;;  %v33_v3 = vld [vmem:[%s494_s2 + $0x28] sm:$0xff] }
   0x2   :  { %259 = vmatpush3.msra.mxu0 %v35_v0  ;;  %277 = vmatprep.subr.mxu1 %v339_v1  ;;  %v133_v4 = vld [vmem:[%s496_s4 + $0x78] sm:$0xff]  ;;  %v132_v5 = vld [vmem:[%s496_s4 + $0x70] sm:$0xff]  ;;  %v32_v6 = vld [vmem:[%s494_s2 + $0x20] sm:$0xff] }
   0x3   :  { %260 = vmatprep.subr.mxu0 %v339_v1  ;;  %309 = vmatprep.mubr.msk.f32.mxu1 %vm340_vm0, %v339_v1  ;;  %v131_v7 = vld [vmem:[%s496_s4 + $0x68] sm:$0xff]  ;;  %v24_v8 = vld [vmem:[%s492_s0] sm:$0xff]  ;;  %v31_v10 = vld [vmem:[%s494_s2 + $0x18] sm:$0xff] }
   0x4   :  { %261 = vmatpush3.msra.mxu0 %v34_v2  ;;  %278 = vmatpush3.msra.mxu1 %v133_v4  ;;  %v25_v9 = vld [vmem:[%s493_s1] sm:$0xff]  ;;  %v30_v12 = vld [vmem:[%s494_s2 + $0x10] sm:$0xff]  ;;  %v129_v14 = vld [vmem:[%s496_s4 + $0x58] sm:$0xff] }
   0x5   :  { %262 = vmatprep.subr.mxu0 %v339_v1  ;;  %279 = vmatprep.subr.mxu1 %v339_v1  ;;  %v130_v11 = vld [vmem:[%s496_s4 + $0x60] sm:$0xff]  ;;  %v26_v13 = vsub.f32 %v24_v8, %v25_v9  ;;  %v29_v15 = vld [vmem:[%s494_s2 + $0x8] sm:$0xff]  ;;  %v128_v16 = vld [vmem:[%s496_s4 + $0x50] sm:$0xff] }
   0x6   :  { %263 = vmatpush3.msra.mxu0 %v33_v3  ;;  %280 = vmatpush3.msra.mxu1 %v132_v5  ;;  %v28_v17 = vld [vmem:[%s494_s2] sm:$0xff]  ;;  %v127_v19 = vld [vmem:[%s496_s4 + $0x48] sm:$0xff]  ;;  %v125_v21 = vld [vmem:[%s496_s4 + $0x38] sm:$0xff] }
   0x7   :  { %264 = vmatprep.subr.mxu0 %v339_v1  ;;  %281 = vmatprep.subr.mxu1 %v339_v1  ;;  %v27_v18 = vand.u32 2147483647, %v26_v13  ;;  %v126_v20 = vld [vmem:[%s496_s4 + $0x40] sm:$0xff]  ;;  %v124_v22 = vld [vmem:[%s496_s4 + $0x30] sm:$0xff]  ;;  %v123_v23 = vld [vmem:[%s496_s4 + $0x28] sm:$0xff] }
   0x8   :  { %265 = vmatpush3.msra.mxu0 %v32_v6  ;;  %282 = vmatpush3.msra.mxu1 %v131_v7  ;;  %v122_v24 = vld [vmem:[%s496_s4 + $0x20] sm:$0xff]  ;;  %v121_v25 = vld [vmem:[%s496_s4 + $0x18] sm:$0xff]  ;;  %v120_v26 = vld [vmem:[%s496_s4 + $0x10] sm:$0xff] }
   0x9   :  { %266 = vmatprep.subr.mxu0 %v339_v1  ;;  %283 = vmatprep.subr.mxu1 %v339_v1  ;;  %v119_v27 = vld [vmem:[%s496_s4 + $0x8] sm:$0xff]  ;;  %v118_v28 = vld [vmem:[%s496_s4] sm:$0xff] }
   0xa   :  { %267 = vmatpush3.msra.mxu0 %v31_v10  ;;  %284 = vmatpush3.msra.mxu1 %v130_v11  ;;  %v229_v29 = vld [vmem:[%s495_s3] ss:$0 sm:$0xff] }
   0xb   :  { %268 = vmatprep.subr.mxu0 %v339_v1  ;;  %285 = vmatprep.subr.mxu1 %v339_v1  ;;  %v231_v34 = vld [vmem:[%s497_s5] ss:$0 sm:$0xff] }
   0xc   :  { %269 = vmatpush3.msra.mxu0 %v30_v12  ;;  %286 = vmatpush3.msra.mxu1 %v129_v14 }
   0xd   :  { %270 = vmatprep.subr.mxu0 %v339_v1  ;;  %287 = vmatprep.subr.mxu1 %v339_v1 }
   0xe   :  { %271 = vmatpush3.msra.mxu0 %v29_v15  ;;  %288 = vmatpush3.msra.mxu1 %v128_v16 }
   0xf   :  { %272 = vmatprep.subr.mxu0 %v339_v1  ;;  %289 = vmatprep.subr.mxu1 %v339_v1 }
  0x10   :  { %273 = vmatpush3.msra.mxu0 %v28_v17  ;;  %290 = vmatpush3.msra.mxu1 %v127_v19 }
  0x11   :  { %275 = vmatmul.mubr.msk.f32.vlgmr.msra.gmra.mxu0 %vm43_vm1, %v27_v18  ;;  %291 = vmatprep.subr.mxu1 %v339_v1 }
  0x12   :  { %292 = vmatpush3.msra.mxu1 %v126_v20 }
  0x13   :  { %293 = vmatprep.subr.mxu1 %v339_v1 }
  0x14   :  { %294 = vmatpush3.msra.mxu1 %v125_v21 }
  0x15   :  { %295 = vmatprep.subr.mxu1 %v339_v1 }
  0x16   :  { %296 = vmatpush3.msra.mxu1 %v124_v22 }
  0x17   :  { %297 = vmatprep.subr.mxu1 %v339_v1 }
  0x18   :  { %298 = vmatpush3.msra.mxu1 %v123_v23 }
  0x19   :  { %299 = vmatprep.subr.mxu1 %v339_v1 }
  0x1a   :  { %300 = vmatpush3.msra.mxu1 %v122_v24 }
  0x1b   :  { %301 = vmatprep.subr.mxu1 %v339_v1 }
  0x1c   :  { %302 = vmatpush3.msra.mxu1 %v121_v25 }
  0x1d   :  { %303 = vmatprep.subr.mxu1 %v339_v1 }
  0x1e   :  { %304 = vmatpush3.msra.mxu1 %v120_v26 }
  0x1f   :  { %305 = vmatprep.subr.mxu1 %v339_v1 }
  0x20   :  { %306 = vmatpush3.msra.mxu1 %v119_v27 }
  0x21   :  { %307 = vmatprep.subr.mxu1 %v339_v1 }
  0x22   :  { %308 = vmatpush3.msra.mxu1 %v118_v28 }
  0xd1   :  { %v113_v30 = vpop.f32.mrf.mxu0 }
  0xd2   :  { %v114_v31 = vadd.f32 %v229_v29, %v113_v30 }
  0xd3   :  { %v276_v32 = vpop.f32.mrf.mxu0 }
  0xd4   :  { %v117_v33 = vmax.f32 %v114_v31, 0.0 }
  0xd6   :  { %310 = vmatmul.mubr.f32.vlgmr.msra.gmra.mxu1 %v117_v33 }
 0x196   :  { %v207_v35 = vpop.f32.mrf.mxu1 }
 0x197   :  { %v208_v36 = vadd.f32 %v231_v34, %v207_v35 }
 0x198   :  { %v311_v37 = vpop.f32.mrf.mxu1 }
 0x199   :  { %212 = vst.msk [vmem:[#allocation2] sm:$0xff] %vm211_vm2, %v208_v36 }
 0x19a   :  { %217 = vsyncadd [#allocation3], 96  ;;  %s341_s4 = smov [#allocation2]  }
 0x19b   :  { %s218_s24 = sshll.u32 %s341_s4, 4  ;;  %s219_s24 = int_to_ptr.vmem [resolvable:$true] %s218_s24 }
 0x19c   :  { %s317_s25 = scalar_lea.vmem %s219_s24, 32  ;;  %s321_s3 = scalar_lea.vmem %s219_s24, 128 }
 0x19d   :  { %p318_p0 = scmp.ne.s32.totalorder %s219_s24, %s317_s25  ;;  %p322_p1 = scmp.lt.s32.totalorder %s219_s24, %s219_s24 }
 0x19e   :  { %p323_p2 = scmp.lt.s32.totalorder %s321_s3, %s317_s25 }
 0x1a0   :  { %p324_p3 = por %p323_p2, %p322_p1 }
 0x1a2   :  { %p325_p4 = pnand %p324_p3, %p318_p0 }
 0x1a4   :  { %328 = shalt.err (!%p325_p4)
}
 0x1a5   :  { %s342_s26 = smov 32   ;;  %s343_s27 = smov 2  }
 0x1a6   :  { %224 = dma.vmem_to_hbm [thread:$0]  %s219_s24, 32, %s498_s6, [#allocation3], %s342_s26, %s342_s26, %s343_s27  }
 0x1a7   :  { %337 = dma.done.wait [#allocation3], 128  }
 0x1a8   :  { %338 = vsyncadd [#allocation3], 4294967168 }
 0x1a9   :  { %228 = vsyncpa [#allocation3], 1 }

</bundles_post_ra>
